<compile_context>
chip_gen: v7x
topology: tpu7x:2x2x1
jax: 0.10.0
libtpu: 0.0.40
codegen_flags: <defaults>
</compile_context>

<pallas_src>
import functools

import jax
import jax.numpy as jnp
from jax import lax
from jax.experimental import pallas as pl
from jax.experimental.pallas import tpu as pltpu

_LANES = 128
_MAX_TILE_ROWS = 2048  # 2048x128 f32 plane = 1 MiB/class; ~8 MiB double-buffered


def _round_up(x, m):
    return ((x + m - 1) // m) * m


def _cdiv(a, b):
    return -(-a // b)


def _iou_kernel(pred_ref, gt_ref, out_ref, acc_ref, *,
                softmax: bool, needs_mask: bool, tile_rows: int,
                hw: int, num_s: int):
    p_id = pl.program_id(1)   # spatial split (parallel)
    s_id = pl.program_id(2)   # spatial tile within split (arbitrary / reduction)

    # Per-class (tile_rows, 128) slabs; upcast to f32 in-kernel (bf16 stays bf16
    # on the wire).
    p0 = pred_ref[0, 0].astype(jnp.float32)
    p1 = pred_ref[0, 1].astype(jnp.float32)
    p2 = pred_ref[0, 2].astype(jnp.float32)
    gt = gt_ref[0, 0]                                   # int32 labels

    if needs_mask:
        # Flat pixel index of every element of this (nominal) tile; anything
        # >= H*W is ragged-tail / padding and must contribute zero.  Mask the
        # pred slabs BEFORE exp/multiply so stale VMEM (NaN/Inf) cannot leak.
        tile_idx = p_id * num_s + s_id
        base = tile_idx * (tile_rows * _LANES)
        row = lax.broadcasted_iota(jnp.int32, (tile_rows, _LANES), 0)
        lane = lax.broadcasted_iota(jnp.int32, (tile_rows, _LANES), 1)
        valid = (base + row * _LANES + lane) < hw
        p0 = jnp.where(valid, p0, 0.0)
        p1 = jnp.where(valid, p1, 0.0)
        p2 = jnp.where(valid, p2, 0.0)
        gt = jnp.where(valid, gt, -1)

    # One-hot masks via three scalar compares (exact PyTorch semantics for any
    # integer label: out-of-range labels count in no class).
    m0 = (gt == 0).astype(jnp.float32)
    m1 = (gt == 1).astype(jnp.float32)
    m2 = (gt == 2).astype(jnp.float32)
    gt_count = m0 + m1 + m2

    if softmax:
        mx = jnp.maximum(jnp.maximum(p0, p1), p2)
        e0 = jnp.exp(p0 - mx)
        e1 = jnp.exp(p1 - mx)
        e2 = jnp.exp(p2 - mx)
        inv = 1.0 / (e0 + e1 + e2)          # exact (approx recip breaks 1e-5 tol)
        inter = (m0 * e0 + m1 * e1 + m2 * e2) * inv
        # Probabilities sum to 1 per valid pixel.
        pred_sum = valid.astype(jnp.float32) if needs_mask else 1.0
    else:
        inter = m0 * p0 + m1 * p1 + m2 * p2
        pred_sum = p0 + p1 + p2

    other = pred_sum + gt_count             # per-pixel pred_sum + gt one-hot count

    # Sublane-reduce the tile with a pure-VALU vreg-add tree.
    if tile_rows % 8 == 0:
        part_i = inter.reshape(tile_rows // 8, 8, _LANES).sum(axis=0)   # (8,128)
        part_o = other.reshape(tile_rows // 8, 8, _LANES).sum(axis=0)
    else:
        # Only happens for small single-tile shapes (rows < 8 multiples).
        part_i = inter.sum(axis=0, keepdims=True)                        # (1,128)
        part_o = other.sum(axis=0, keepdims=True)

    if num_s == 1:
        # Single spatial tile per (b, split): write partials directly.
        out_ref[0, 0, 0] = part_i
        out_ref[0, 0, 1] = part_o - part_i          # union partial
    else:
        @pl.when(s_id == 0)
        def _():
            acc_ref[0] = part_i
            acc_ref[1] = part_o

        @pl.when(s_id > 0)
        def _():
            acc_ref[0] = acc_ref[0] + part_i
            acc_ref[1] = acc_ref[1] + part_o

        @pl.when(s_id == num_s - 1)
        def _():
            out_ref[0, 0, 0] = acc_ref[0]
            out_ref[0, 0, 1] = acc_ref[1] - acc_ref[0]


def iou_loss(pred, gt, softmax: bool = False, max_tile_rows: int = _MAX_TILE_ROWS):
    """pred: (B, 3, H, W) float (f32 or bf16), gt: (B, 1, H, W) int labels."""
    B, C, H, W = pred.shape
    assert C == 3, "IoUMetric hard-codes 3 classes"
    HW = H * W

    rows = _cdiv(HW, _LANES)
    pad_lanes = rows * _LANES - HW

    pred_f = pred.reshape(B, C, HW)                 # keep input dtype (no widening)
    gt_f = gt.reshape(B, 1, HW)
    if gt_f.dtype != jnp.int32:
        gt_f = gt_f.astype(jnp.int32)
    if pad_lanes:
        # Only when H*W is not a multiple of 128 (rare); minimal pad.
        pred_f = jnp.pad(pred_f, ((0, 0), (0, 0), (0, pad_lanes)))
        gt_f = jnp.pad(gt_f, ((0, 0), (0, 0), (0, pad_lanes)), constant_values=-1)
    pred_r = pred_f.reshape(B, C, rows, _LANES)     # lane-dense, bitcast-only
    gt_r = gt_f.reshape(B, 1, rows, _LANES)

    # ---- Tiling / grid derivation (all static Python) ----------------------
    tile_rows = rows if rows <= max_tile_rows else max_tile_rows
    num_s_total = _cdiv(rows, tile_rows)
    # v7x has 2 TensorCores: make sure the parallel grid has >=2 units even for
    # B == 1 (or odd B) by splitting the spatial axis when possible.
    if num_s_total == 1 and (B % 2 == 1) and rows >= 16:
        tile_rows = _round_up(_cdiv(rows, 2), 8)
        num_s_total = _cdiv(rows, tile_rows)        # == 2
    nsplit = 2 if num_s_total >= 2 else 1
    num_s = _cdiv(num_s_total, nsplit)
    coverage = nsplit * num_s * tile_rows * _LANES
    needs_mask = (coverage > rows * _LANES) or (softmax and pad_lanes > 0)

    out_sub = 8 if tile_rows % 8 == 0 else 1
    last_tile = num_s_total - 1
    need_clamp = nsplit * num_s > num_s_total

    def in_map(b, p, s):
        t = p * num_s + s
        if need_clamp:
            t = jnp.minimum(t, last_tile)   # never index a fully-OOB block
        return (b, 0, t, 0)

    kernel = functools.partial(
        _iou_kernel, softmax=softmax, needs_mask=needs_mask,
        tile_rows=tile_rows, hw=HW, num_s=num_s)

    partials = pl.pallas_call(
        kernel,
        out_shape=jax.ShapeDtypeStruct((B, nsplit, 2, out_sub, _LANES),
                                       jnp.float32),
        grid_spec=pltpu.PrefetchScalarGridSpec(
            num_scalar_prefetch=0,
            grid=(B, nsplit, num_s),
            in_specs=[
                pl.BlockSpec((1, C, tile_rows, _LANES), in_map),
                pl.BlockSpec((1, 1, tile_rows, _LANES), in_map),
            ],
            out_specs=pl.BlockSpec((1, 1, 2, out_sub, _LANES),
                                   lambda b, p, s: (b, p, 0, 0, 0)),
            scratch_shapes=[pltpu.VMEM((2, 8, _LANES), jnp.float32)],
        ),
        compiler_params=pltpu.CompilerParams(
            dimension_semantics=("parallel", "parallel", "arbitrary"),
            vmem_limit_bytes=32 * 1024 * 1024),
    )(pred_r, gt_r)

    # Tiny scalar epilogue in plain JAX: combine partials, IoU smoothing,
    # mean over batch, -log.
    sums = partials.sum(axis=(1, 3, 4))             # (B, 2): [inter, union]
    iou = (sums[:, 0] + 0.001) / (sums[:, 1] + 0.001)
    return -jnp.log(jnp.mean(iou))


def iou_loss_ref(pred, gt, softmax: bool = False):
    """Pure-JAX reference mirroring the PyTorch module."""
    p = pred.astype(jnp.float32)
    if softmax:
        p = jax.nn.softmax(p, axis=1)
    gt_oh = jnp.concatenate([(gt == i) for i in range(3)], axis=1).astype(jnp.float32)
    inter = gt_oh * p
    union = gt_oh + p - inter
    iou = (inter.sum(axis=(1, 2, 3)) + 0.001) / (union.sum(axis=(1, 2, 3)) + 0.001)
    return -jnp.log(iou.mean())


if __name__ == "__main__":
    key = jax.random.PRNGKey(0)
    kp, kg = jax.random.split(key)

    # Primary small test (module default softmax=False, plus softmax=True).
    B, C, H, W = 2, 3, 16, 16
    pred = jax.random.uniform(kp, (B, C, H, W), dtype=jnp.float32)
    gt = jax.random.randint(kg, (B, 1, H, W), 0, 3, dtype=jnp.int32)
    for sm in (False, True):
        out = jax.block_until_ready(iou_loss(pred, gt, softmax=sm))
        ref = jax.block_until_ready(iou_loss_ref(pred, gt, softmax=sm))
        assert jnp.isfinite(out), ("non-finite loss", sm)
        assert jnp.allclose(out, ref, rtol=1e-5, atol=1e-5), (sm, out, ref)

    # Ragged-lane case (H*W not a multiple of 128): exercises the in-kernel mask.
    pred2 = jax.random.uniform(kp, (1, 3, 20, 12), dtype=jnp.float32)
    gt2 = jax.random.randint(kg, (1, 1, 20, 12), 0, 3, dtype=jnp.int32)
    for sm in (False, True):
        out = jax.block_until_ready(iou_loss(pred2, gt2, softmax=sm))
        ref = jax.block_until_ready(iou_loss_ref(pred2, gt2, softmax=sm))
        assert jnp.allclose(out, ref, rtol=1e-5, atol=1e-5), (sm, out, ref)

    # Multi-tile + 2-way parallel-split + clamped-index path (small
    # max_tile_rows forces the accumulation path at a tiny shape).
    pred3 = jax.random.uniform(kp, (1, 3, 48, 64), dtype=jnp.float32)
    gt3 = jax.random.randint(kg, (1, 1, 48, 64), 0, 3, dtype=jnp.int32)
    for sm in (False, True):
        out = jax.block_until_ready(iou_loss(pred3, gt3, softmax=sm, max_tile_rows=8))
        ref = jax.block_until_ready(iou_loss_ref(pred3, gt3, softmax=sm))
        assert jnp.allclose(out, ref, rtol=1e-5, atol=1e-5), (sm, out, ref)

    print("KERNEL_OK")
</pallas_src>

<mosaic_0001>
module attributes {stable_mosaic.version = 11 : i64} {
  func.func @_iou_kernel(%arg0: i32, %arg1: i32, %arg2: i32, %arg3: memref<1x3x2x128xf32, #tpu.memory_space<vmem>>, %arg4: memref<1x1x2x128xi32, #tpu.memory_space<vmem>>, %arg5: memref<1x1x2x1x128xf32, #tpu.memory_space<vmem>>, %arg6: memref<2x8x128xf32, #tpu.memory_space<vmem>>) attributes {dimension_semantics = [#tpu.dimension_semantics<parallel>, #tpu.dimension_semantics<parallel>, #tpu.dimension_semantics<arbitrary>], iteration_bounds = array<i64: 2, 1, 1>, scalar_prefetch = 0 : i64, scratch_operands = 1 : i64, tpu.core_type = #tpu.core_type<tc>, window_params = [{transform_indices = @transform_0, window_bounds = array<i64: 1, 3, 2, 128>}, {transform_indices = @transform_1, window_bounds = array<i64: 1, 1, 2, 128>}, {transform_indices = @transform_2, window_bounds = array<i64: 1, 1, 2, 1, 128>}]} {
    %c0 = arith.constant 0 : index
    %c0_0 = arith.constant 0 : index
    %c0_1 = arith.constant 0 : index
    %c0_2 = arith.constant 0 : index
    %0 = vector.load %arg3[%c0, %c0_0, %c0_1, %c0_2] : memref<1x3x2x128xf32, #tpu.memory_space<vmem>>, vector<1x1x2x128xf32>
    %1 = vector.shape_cast %0 : vector<1x1x2x128xf32> to vector<2x128xf32>
    %c0_3 = arith.constant 0 : index
    %c1 = arith.constant 1 : index
    %c0_4 = arith.constant 0 : index
    %c0_5 = arith.constant 0 : index
    %2 = vector.load %arg3[%c0_3, %c1, %c0_4, %c0_5] : memref<1x3x2x128xf32, #tpu.memory_space<vmem>>, vector<1x1x2x128xf32>
    %3 = vector.shape_cast %2 : vector<1x1x2x128xf32> to vector<2x128xf32>
    %c0_6 = arith.constant 0 : index
    %c2 = arith.constant 2 : index
    %c0_7 = arith.constant 0 : index
    %c0_8 = arith.constant 0 : index
    %4 = vector.load %arg3[%c0_6, %c2, %c0_7, %c0_8] : memref<1x3x2x128xf32, #tpu.memory_space<vmem>>, vector<1x1x2x128xf32>
    %5 = vector.shape_cast %4 : vector<1x1x2x128xf32> to vector<2x128xf32>
    %c0_9 = arith.constant 0 : index
    %c0_10 = arith.constant 0 : index
    %c0_11 = arith.constant 0 : index
    %c0_12 = arith.constant 0 : index
    %6 = vector.load %arg4[%c0_9, %c0_10, %c0_11, %c0_12] : memref<1x1x2x128xi32, #tpu.memory_space<vmem>>, vector<1x1x2x128xi32>
    %7 = vector.shape_cast %6 : vector<1x1x2x128xi32> to vector<2x128xi32>
    %c0_i32 = arith.constant 0 : i32
    %8 = vector.broadcast %c0_i32 : i32 to vector<2x128xi32>
    %9 = arith.cmpi eq, %7, %8 : vector<2x128xi32>
    %10 = arith.extui %9 : vector<2x128xi1> to vector<2x128xi32>
    %11 = arith.sitofp %10 : vector<2x128xi32> to vector<2x128xf32>
    %c1_i32 = arith.constant 1 : i32
    %12 = vector.broadcast %c1_i32 : i32 to vector<2x128xi32>
    %13 = arith.cmpi eq, %7, %12 : vector<2x128xi32>
    %14 = arith.extui %13 : vector<2x128xi1> to vector<2x128xi32>
    %15 = arith.sitofp %14 : vector<2x128xi32> to vector<2x128xf32>
    %c2_i32 = arith.constant 2 : i32
    %16 = vector.broadcast %c2_i32 : i32 to vector<2x128xi32>
    %17 = arith.cmpi eq, %7, %16 : vector<2x128xi32>
    %18 = arith.extui %17 : vector<2x128xi1> to vector<2x128xi32>
    %19 = arith.sitofp %18 : vector<2x128xi32> to vector<2x128xf32>
    %20 = arith.addf %11, %15 : vector<2x128xf32>
    %21 = arith.addf %20, %19 : vector<2x128xf32>
    %22 = arith.mulf %11, %1 : vector<2x128xf32>
    %23 = arith.mulf %15, %3 : vector<2x128xf32>
    %24 = arith.addf %22, %23 : vector<2x128xf32>
    %25 = arith.mulf %19, %5 : vector<2x128xf32>
    %26 = arith.addf %24, %25 : vector<2x128xf32>
    %27 = arith.addf %1, %3 : vector<2x128xf32>
    %28 = arith.addf %27, %5 : vector<2x128xf32>
    %29 = arith.addf %28, %21 : vector<2x128xf32>
    %cst = arith.constant dense<0.000000e+00> : vector<128xf32>
    %30 = vector.multi_reduction <add>, %26, %cst [0] : vector<2x128xf32> to vector<128xf32>
    %31 = vector.shape_cast %30 : vector<128xf32> to vector<1x128xf32>
    %cst_13 = arith.constant dense<0.000000e+00> : vector<128xf32>
    %32 = vector.multi_reduction <add>, %29, %cst_13 [0] : vector<2x128xf32> to vector<128xf32>
    %33 = vector.shape_cast %32 : vector<128xf32> to vector<1x128xf32>
    %c0_14 = arith.constant 0 : index
    %c0_15 = arith.constant 0 : index
    %c0_16 = arith.constant 0 : index
    %c0_17 = arith.constant 0 : index
    %c0_18 = arith.constant 0 : index
    %34 = vector.load %arg5[%c0_14, %c0_15, %c0_16, %c0_17, %c0_18] : memref<1x1x2x1x128xf32, #tpu.memory_space<vmem>>, vector<1x1x1x1x128xf32>
    %35 = vector.shape_cast %34 : vector<1x1x1x1x128xf32> to vector<1x128xf32>
    %36 = vector.shape_cast %31 : vector<1x128xf32> to vector<1x1x1x1x128xf32>
    tpu.vector_store %arg5[%c0_14, %c0_15, %c0_16, %c0_17, %c0_18], %36 {strides = array<i32>} : memref<1x1x2x1x128xf32, #tpu.memory_space<vmem>>, vector<1x1x1x1x128xf32>,
    %37 = arith.subf %33, %31 : vector<1x128xf32>
    %c0_19 = arith.constant 0 : index
    %c0_20 = arith.constant 0 : index
    %c1_21 = arith.constant 1 : index
    %c0_22 = arith.constant 0 : index
    %c0_23 = arith.constant 0 : index
    %38 = vector.load %arg5[%c0_19, %c0_20, %c1_21, %c0_22, %c0_23] : memref<1x1x2x1x128xf32, #tpu.memory_space<vmem>>, vector<1x1x1x1x128xf32>
    %39 = vector.shape_cast %38 : vector<1x1x1x1x128xf32> to vector<1x128xf32>
    %40 = vector.shape_cast %37 : vector<1x128xf32> to vector<1x1x1x1x128xf32>
    tpu.vector_store %arg5[%c0_19, %c0_20, %c1_21, %c0_22, %c0_23], %40 {strides = array<i32>} : memref<1x1x2x1x128xf32, #tpu.memory_space<vmem>>, vector<1x1x1x1x128xf32>,
    return
  }
  func.func @transform_0(%arg0: i32, %arg1: i32, %arg2: i32) -> (i32, i32, i32, i32) {
    %c1_i32 = arith.constant 1 : i32
    %0 = arith.muli %arg1, %c1_i32 : i32
    %1 = arith.addi %0, %arg2 : i32
    %c0_i32 = arith.constant 0 : i32
    %c0_i32_0 = arith.constant 0 : i32
    %c0_i32_1 = arith.constant 0 : i32
    return %arg0, %c0_i32, %1, %c0_i32_0 : i32, i32, i32, i32
  }
  func.func @transform_1(%arg0: i32, %arg1: i32, %arg2: i32) -> (i32, i32, i32, i32) {
    %c1_i32 = arith.constant 1 : i32
    %0 = arith.muli %arg1, %c1_i32 : i32
    %1 = arith.addi %0, %arg2 : i32
    %c0_i32 = arith.constant 0 : i32
    %c0_i32_0 = arith.constant 0 : i32
    %c0_i32_1 = arith.constant 0 : i32
    return %arg0, %c0_i32, %1, %c0_i32_0 : i32, i32, i32, i32
  }
  func.func @transform_2(%arg0: i32, %arg1: i32, %arg2: i32) -> (i32, i32, i32, i32, i32) {
    %c0_i32 = arith.constant 0 : i32
    %c0_i32_0 = arith.constant 0 : i32
    %c0_i32_1 = arith.constant 0 : i32
    %c0_i32_2 = arith.constant 0 : i32
    return %arg0, %arg1, %c0_i32, %c0_i32_0, %c0_i32_1 : i32, i32, i32, i32, i32
  }
}

</mosaic_0001>

<bundles_post_ra>
// kernel: tpu_custom_call.1
= control target key start
LH: loop header
LB: loop body
LE: loop exit
PB: predicated region body
PF: predicated region fallthrough
CT: control target
= control target key end

     0   :  { %7 = vsyncpa [#allocation4], 0  ;;  %s895_s0 = inlined_call_operand.hbm [shape: f32[2,3,2,128], index: 0, kind: input, shape index: {}]   ;;  %s896_s1 = inlined_call_operand.hbm [shape: s32[2,1,2,128], index: 1, kind: input, shape index: {}]   ;;  %s897_s2 = inlined_call_operand.hbm [shape: f32[2,1,2,1,128], index: 2, kind: output, shape index: {}]  }
   0x1   :  { %9 = vsyncpa [#allocation4 + $0x1], 0 }
   0x2   :  { %10 = vsyncpa [#allocation7], 0 }
   0x3   :  { %12 = vsyncpa [#allocation7 + $0x1], 0 }
   0x4   :  { %13 = vsyncpa [#allocation5], 0 }
   0x5   :  { %15 = vsyncpa [#allocation5 + $0x1], 0  ;;  %s674_s9 = smov 0   ;;  %s676_s10 = smov 0  }
   0x6   :  { %s678_s11 = smov 0   ;;  %s680_s12 = smov 0  }
   0x7   :  { %s682_s13 = smov 0   ;;  %s684_s14 = smov 0  }
   0x8 LB: > { %s406_s15 = sadd.s32 4294967295, %s649_s14   ;;  %s407_s16 = sadd.s32 4294967294, %s649_s14   ;;  %s649_s14 = sphi %s684_s14, %s21_s14   ;;  %s645_s13 = sphi %s682_s13, %s916_s13   ;;  %s641_s12 = sphi %s680_s12, %s915_s12   ;;  %s637_s11 = sphi %s678_s11, %s914_s11   ;;  %s633_s10 = sphi %s676_s10, %s913_s10   ;;  %s629_s9 = sphi %s674_s9, %s912_s9  }
   0x9   : > { %s40_s17 = sadd.s32 1, %s645_s13  ;;  %s51_s18 = sadd.s32 1, %s637_s11 }
   0xa   : > { %p42_p0 = scmp.ge.s32.totalorder %s40_s17, 2  ;;  %p58_p1 = scmp.ne.s32.totalorder %s637_s11, %s633_s10 }
   0xb   : > { %p59_p2 = scmp.eq.s32.totalorder %s649_s14, 0  ;;  %p64_p3 = scmp.ne.s32.totalorder %s633_s10, %s629_s9 }
   0xc   : > { %s918_s17 = smov (%p42_p0, %s40_s17), 0  ;;  %p65_p5 = scmp.eq.s32.totalorder %s406_s15, 0 }
   0xd   : > { %p715_p4 = por %p59_p2, %p58_p1  ;;  %s46_s20 = ssub.s32 %s645_s13, %s918_s17 }
   0xe   : > { %p120_p6 = scmp.eq.s32.totalorder %s406_s15, 1  ;;  %p49_p7 = scmp.eq.s32.totalorder %s46_s20, 0 }
   0xf   : > { %p721_p8 = por %p65_p5, %p64_p3  ;;  %p126_p10 = scmp.eq.s32.totalorder %s407_s16, 1 }
  0x10   : > { %p725_p9 = por %p120_p6, %p58_p1  ;;  %p448_p13 = scmp.lt.s32.totalorder %s649_s14, 2 }
  0x11   : > { %s901_s21 = scalar_select %p721_p8, 1, 0 }
  0x12   : > { %s902_s22 = scalar_select %p725_p9, 1, 0 }
  0x13   : > { %s730_s23 = scalar_select %p49_p7, %s637_s11, %s51_s18  }
  0x14   : > { %p732_p11 = por %p126_p10, %p64_p3  ;;  %s739_s25 = sand.u32 1, %s637_s11  }
  0x15   : > { %s428_s26 = smul.u32 6, %s739_s25  ;;  %p745_p0 = pnand %p448_p13, %p715_p4 }
  0x16   : > { %s903_s24 = scalar_select %p732_p11, 1, 0 }
  0x17   : > { %s429_s27 = smul.u32 96, %s645_s13  ;;  %s150_s4 = scalar_lea.vmem [#allocation3], %s428_s26 }
  0x18   : > { %s159_s5 = sshll.u32 %s150_s4, 4  ;;  %s147_s6 = scalar_lea.sflag [#allocation4], %s739_s25  ;;  %s754_s5 = int_to_ptr.vmem [resolvable:$true] %s159_s5 }
  0x19   : > { %s752_s3 = scalar_lea.hbm %s895_s0, %s429_s27  ;;  %p505_p3 = pneg %p745_p0 }
  0x1a   : > { %s503_s7 = scalar_lea.hbm %s752_s3, 96  ;;  %s508_s16 = scalar_lea.hbm %s895_s0, 192 }
  0x1b   : > { %p504_p2 = scmp.ne.s32.totalorder %s752_s3, %s503_s7  ;;  %p509_p6 = scmp.lt.u32.totalorder %s752_s3, %s895_s0 }
  0x1c   : > { %p510_p7 = scmp.lt.u32.totalorder %s508_s16, %s503_s7  ;;  %p512_p13 = scmp.lt.u32.totalorder %s503_s7, %s752_s3 }
  0x1d   : > { %p506_p4 = pnand %p505_p3, %p504_p2 }
  0x1e   : > { %p511_p10 = por %p510_p7, %p509_p6 }
  0x1f   : > { %p507_p5 = pneg %p506_p4 }
  0x20   : > { %p513_p12 = por %p512_p13, %p511_p10 }
  0x22   : > { %p514_p1 = pnand %p513_p12, %p507_p5 }
  0x24   : > { %517 = shalt.err (!%p514_p1)
}
  0x25   : > { %s518_s20 = scalar_lea.vmem %s754_s5, 96  ;;  %s651_s26 = smov [#allocation3]  }
  0x26   : > { %p519_p2 = scmp.ne.s32.totalorder %s754_s5, %s518_s20  ;;  %s523_s27 = sshll.u32 %s651_s26, 4  ;;  %s524_s27 = int_to_ptr.vmem [resolvable:$false] %s523_s27 }
  0x27   : > { %s525_s29 = scalar_lea.vmem %s524_s27, 192  ;;  %p526_p9 = scmp.lt.s32.totalorder %s754_s5, %s524_s27 }
  0x28   : > { %p521_p4 = pnand %p519_p2, %p505_p3  ;;  %p527_p6 = scmp.lt.s32.totalorder %s525_s29, %s518_s20 }
  0x2a   : > { %p522_p11 = pneg %p521_p4  ;;  %p528_p7 = por %p527_p6, %p526_p9 }
  0x2c   : > { %p529_p10 = pnand %p528_p7, %p522_p11 }
  0x2e   : > { %532 = shalt.err (!%p529_p10)
}
  0x2f   : > { %s652_s30 = smov 32   ;;  %s653_s4 = smov 2  }
  0x30   : > { %440 = dma.hbm_to_vmem [thread:$0]  (!%p745_p0), %s752_s3, 96, %s754_s5, %s147_s6, %s652_s30, %s652_s30, %s653_s4  }
  0x31   : > { %p187_p12 = scmp.lt.s32.totalorder %s649_s14, 3  ;;  %s411_s7 = sshll.u32 %s739_s25, 1 }
  0x32   : > { %s412_s8 = sshll.u32 %s645_s13, 5  ;;  %p905_p9 = scmp.ge.s32.totalorder %s649_s14, 1 }
  0x33   : > { %s797_s19 = scalar_lea.hbm %s896_s1, %s412_s8  ;;  %s173_s20 = scalar_lea.vmem [#allocation6], %s411_s7 }
  0x34   : > { %p790_p11 = pnand %p905_p9, %p187_p12  ;;  %s182_s26 = sshll.u32 %s173_s20, 4  ;;  %s183_s26 = int_to_ptr.vmem [resolvable:$true] %s182_s26 }
  0x35   : > { %s170_s3 = scalar_lea.sflag [#allocation7], %s739_s25  ;;  %s533_s5 = scalar_lea.hbm %s797_s19, 32 }
  0x36   : > { %s906_s15 = scalar_select %p790_p11, 1, 0 }
  0x37   : > { %p534_p1 = scmp.ne.s32.totalorder %s797_s19, %s533_s5  ;;  %s538_s29 = scalar_lea.hbm %s896_s1, 64 }
  0x38   : > { %p539_p2 = scmp.lt.u32.totalorder %s797_s19, %s896_s1  ;;  %p540_p4 = scmp.lt.u32.totalorder %s538_s29, %s533_s5 }
  0x39   : > { %p536_p5 = pnand %p534_p1, %p505_p3  ;;  %p542_p7 = scmp.lt.u32.totalorder %s533_s5, %s797_s19 }
  0x3a   : > { %p541_p6 = por %p540_p4, %p539_p2 }
  0x3b   : > { %p537_p13 = pneg %p536_p5 }
  0x3c   : > { %p543_p10 = por %p542_p7, %p541_p6 }
  0x3e   : > { %p544_p12 = pnand %p543_p10, %p537_p13 }
  0x40   : > { %547 = shalt.err (!%p544_p12)
}
  0x41   : > { %s548_s25 = scalar_lea.vmem %s183_s26, 32  ;;  %s654_s7 = smov [#allocation6]  }
  0x42   : > { %p549_p9 = scmp.ne.s32.totalorder %s183_s26, %s548_s25  ;;  %s553_s8 = sshll.u32 %s654_s7, 4  ;;  %s554_s8 = int_to_ptr.vmem [resolvable:$false] %s553_s8 }
  0x43   : > { %s555_s16 = scalar_lea.vmem %s554_s8, 64  ;;  %p556_p8 = scmp.lt.s32.totalorder %s183_s26, %s554_s8 }
  0x44   : > { %p551_p1 = pnand %p549_p9, %p505_p3  ;;  %p557_p11 = scmp.lt.s32.totalorder %s555_s16, %s548_s25 }
  0x46   : > { %p552_p5 = pneg %p551_p1  ;;  %p558_p2 = por %p557_p11, %p556_p8 }
  0x48   : > { %p559_p4 = pnand %p558_p2, %p552_p5 }
  0x4a   : > { %562 = shalt.err (!%p559_p4)
}
  0x4b   : > { %443 = dma.hbm_to_vmem [thread:$0]  (!%p745_p0), %s797_s19, 32, %s183_s26, %s170_s3  }
  0x4c   : > { %p907_p13 = scmp.ne.s32.totalorder %s906_s15, 0 }
  0x4d   : > { %s822_s18 = sand.u32 (!%p907_p13), 1, %s633_s10   ;;  %p908_p3 = scmp.ne.s32.totalorder (!%p907_p13), %s901_s21, 0 }
  0x4e   : > { %191 = sbr.rel (%p907_p13) target bundleno = 129 (0x81), region = 28  ;;  %s194_s5 = scalar_lea.sflag (!%p907_p13), [#allocation4], %s822_s18 }
  0x4f   : > { %s430_s20 = smul.u32 (!%p907_p13), 6, %s822_s18 }
  0x51   : > { %s197_s6 = scalar_lea.vmem (!%p907_p13), [#allocation3], %s430_s20 }
  0x55   : > { %616 = dma.done.wait (%p908_p3), %s194_s5, 96  }
  0x56   : > { %618 = vsyncadd (%p908_p3), %s194_s5, 4294967200  ;;  %s414_s28 = sshll.u32 %s822_s18, 1  ;;  %s203_s15 = scalar_lea.sflag [#allocation7], %s822_s18 }
  0x57   : > { %s206_s19 = scalar_lea.vmem [#allocation6], %s414_s28 }
  0x58   : > { %620 = dma.done.wait (%p908_p3), %s203_s15, 32  }
  0x59   : > { %622 = vsyncadd (%p908_p3), %s203_s15, 4294967264  ;;  %v234_v0 = vld [vmem:[%s197_s6] sm:$0x3]  ;;  %v416_v1 = vld [vmem:[%s197_s6 + $0x2] sm:$0x3]  ;;  %v655_v5 = vmov 0.0  }
  0x5a   : > { %v417_v2 = vld [vmem:[%s197_s6 + $0x4] sm:$0x3]  ;;  %v239_v3 = vld [vmem:[%s206_s19] sm:$0x3]  ;;  %v256_v4 = vadd.f32 %v416_v1, %v234_v0  ;;  %vm259_vm3 = vcmask 1041408   ;;  %s231_s21 = scalar_lea.vmem [#allocation8], %s414_s28 }
  0x5b   : > { %vm240_vm0 = vcmp.eq.s32.totalorder %v239_v3, 0  ;;  %vm243_vm1 = vcmp.eq.s32.totalorder %v239_v3, 1  ;;  %vm246_vm2 = vcmp.eq.s32.totalorder %v239_v3, 2  ;;  %s294_s26 = sshll.u32 %s231_s21, 4  ;;  %s427_s3 = sshll.u32 %s641_s12, 5  ;;  %s841_s26 = int_to_ptr.vmem [resolvable:$true] %s294_s26 }
  0x5c   : > { %v418_v6 = vsel %vm240_vm0, 1.0, %v655_v5  ;;  %v419_v7 = vsel %vm243_vm1, 1.0, %v655_v5  ;;  %v420_v8 = vsel %vm246_vm2, 1.0, %v655_v5  ;;  %v257_v9 = vadd.f32 %v417_v2, %v256_v4  ;;  %s846_s30 = scalar_lea.hbm %s897_s2, %s427_s3  ;;  %s279_s4 = scalar_lea.sflag [#allocation5], %s822_s18 }
  0x5d   : > { %v251_v10 = vmul.f32 %v418_v6, %v234_v0  ;;  %v252_v11 = vmul.f32 %v419_v7, %v416_v1  ;;  %v254_v12 = vmul.f32 %v420_v8, %v417_v2  ;;  %v249_v13 = vadd.f32 %v419_v7, %v418_v6  ;;  %s563_s25 = scalar_lea.vmem %s841_s26, 32  ;;  %p909_p0 = scmp.ne.s32.totalorder %s902_s22, 0 }
  0x5e   : > { %p564_p8 = scmp.ne.s32.totalorder %s841_s26, %s563_s25  ;;  %s656_s12 = smov [#allocation8]  }
  0x5f   : > { %v253_v14 = vadd.f32 %v252_v11, %v251_v10  ;;  %v250_v15 = vadd.f32 %v420_v8, %v249_v13  ;;  %s567_s7 = sshll.u32 %s656_s12, 4  ;;  %s568_s7 = int_to_ptr.vmem [resolvable:$false] %s567_s7 }
  0x60   : > { %p565_p11 = pnand %p564_p8, %p909_p0  ;;  %s569_s8 = scalar_lea.vmem %s568_s7, 64 }
  0x61   : > { %v255_v16 = vadd.f32 %v254_v12, %v253_v14  ;;  %v258_v17 = vadd.f32 %v257_v9, %v250_v15  ;;  %p570_p7 = scmp.lt.s32.totalorder %s841_s26, %s568_s7  ;;  %p571_p10 = scmp.lt.s32.totalorder %s569_s8, %s563_s25 }
  0x62   : > { %p566_p6 = pneg %p565_p11 }
  0x63   : > { %v260_v18 = vsel %vm259_vm3, %v255_v16, 0.0  ;;  %v267_v19 = vsel %vm259_vm3, %v258_v17, 0.0  ;;  %p572_p12 = por %p571_p10, %p570_p7 }
  0x64   : > { %v261_v20 = vrot.slane %v260_v18, 4  ;;  %v268_v21 = vrot.slane %v267_v19, 4 }
  0x65   : > { %p573_p9 = pnand %p572_p12, %p566_p6 }
  0x66   : > { %v262_v22 = vadd.f32 %v261_v20, %v260_v18  ;;  %v269_v23 = vadd.f32 %v268_v21, %v267_v19 }
  0x68   : > { %v263_v24 = vrot.slane %v262_v22, 2  ;;  %v270_v25 = vrot.slane %v269_v23, 2 }
  0x6a   : > { %v264_v26 = vadd.f32 %v263_v24, %v262_v22  ;;  %v271_v27 = vadd.f32 %v270_v25, %v269_v23 }
  0x6c   : > { %v265_v28 = vrot.slane %v264_v26, 1  ;;  %v272_v29 = vrot.slane %v271_v27, 1 }
  0x6e   : > { %v266_v30 = vadd.f32 %v265_v28, %v264_v26  ;;  %v273_v31 = vadd.f32 %v272_v29, %v271_v27 }
  0x70   : > { %274 = vst [vmem:[%s231_s21] sm:$0x1] %v266_v30  ;;  %v275_v32 = vsub.f32 %v273_v31, %v266_v30 }
  0x72   : > { %421 = vst [vmem:[%s231_s21 + $0x1] sm:$0x1] %v275_v32 }
  0x73   : > { %576 = shalt.err (!%p573_p9)
}
  0x74   : > { %s577_s16 = scalar_lea.hbm %s846_s30, 32  ;;  %s581_s6 = scalar_lea.hbm %s897_s2, 64 }
  0x75   : > { %p578_p1 = scmp.ne.s32.totalorder %s846_s30, %s577_s16  ;;  %p582_p4 = scmp.lt.u32.totalorder %s846_s30, %s897_s2 }
  0x76   : > { %p583_p13 = scmp.lt.u32.totalorder %s581_s6, %s577_s16  ;;  %p585_p8 = scmp.lt.u32.totalorder %s577_s16, %s846_s30 }
  0x77   : > { %p579_p5 = pnand %p578_p1, %p909_p0 }
  0x78   : > { %p584_p3 = por %p583_p13, %p582_p4 }
  0x79   : > { %p580_p2 = pneg %p579_p5 }
  0x7a   : > { %p586_p11 = por %p585_p8, %p584_p3 }
  0x7c   : > { %p587_p6 = pnand %p586_p11, %p580_p2 }
  0x7e   : > { %590 = shalt.err (!%p587_p6)
}
  0x7f   : > { %s657_s19 = smov 16   ;;  %s658_s21 = smov 1  }
  0x80   : > { %435 = dma.vmem_to_hbm [thread:$0]  (%p909_p0), %s841_s26, 32, %s846_s30, %s279_s4, %s657_s19, %s657_s19, %s658_s21  }
  0x81 PF: > { %s309_s3 = sand.u32 1, %s629_s9   ;;  %p910_p7 = scmp.ne.s32.totalorder %s903_s24, 0 }
  0x82   : > { %p911_p10 = scmp.ge.s32.totalorder %s649_s14, 2  ;;  %s310_s27 = scalar_lea.sflag [#allocation5], %s309_s3 }
  0x84   : > { %p445_p12 = pnand %p911_p10, %p910_p7 }
  0x86   : > { %624 = dma.done.wait (!%p445_p12), %s310_s27, 32  }
  0x87   : > { %626 = vsyncadd (!%p445_p12), %s310_s27, 4294967264  ;;  %s21_s14 = sadd.s32 1, %s649_s14   ;;  %s912_s9 = smov %s633_s10 }
  0x88   : > { %p18_p9 = scmp.ge.s32.totalorder %s21_s14, 4   ;;  %s913_s10 = smov %s637_s11 }
  0x89   : > { %s914_s11 = smov %s730_s23  ;;  %s915_s12 = smov %s645_s13 }
  0x8a   : > { %s916_s13 = smov %s918_s17  ;;  %20 = sbr.rel (!%p18_p9) target bundleno = 8 (0x8), region = 89 }
  0x91   :  { %315 = vsyncpa [#allocation4], 1 }
  0x92   :  { %317 = vsyncpa [#allocation4 + $0x1], 1 }
  0x93   :  { %318 = vsyncpa [#allocation7], 1 }
  0x94   :  { %320 = vsyncpa [#allocation7 + $0x1], 1 }
  0x95   :  { %321 = vsyncpa [#allocation5], 1 }
  0x96   :  { %323 = vsyncpa [#allocation5 + $0x1], 1 }

</bundles_post_ra>
